<compile_context>
chip_gen: v7x
topology: tpu7x:2x2x1
jax: 0.10.0
libtpu: 0.0.40
codegen_flags: <defaults>
</compile_context>

<pallas_src>
import functools

import jax
import jax.numpy as jnp
from jax.experimental import pallas as pl
from jax.experimental.pallas import tpu as pltpu

BN_EPS = 1e-5
LEAKY_SLOPE = 0.01      # PyTorch nn.LeakyReLU default negative_slope
MAX_LANE_TILE = 2048    # upper bound on the lane tile over output positions


def _round_up(x, m):
    return ((x + m - 1) // m) * m


def _conv_tile(w_ref, xm_ref, xh_ref, K, LT):
    """Conv1d tile: sum_k W_k @ window[:, k:k+LT]; bf16 MXU, f32 accumulate."""
    xm = xm_ref[0]                                       # (c_in_p, LT)  bf16
    acc = jnp.dot(w_ref[0], xm, preferred_element_type=jnp.float32)
    if K > 1:
        xh = xh_ref[0]                                   # (c_in_p, 128) bf16 halo
        xw = jnp.concatenate([xm, xh], axis=-1)          # (c_in_p, LT + 128)
        for k in range(1, K):
            acc = acc + jnp.dot(w_ref[k], xw[:, k:k + LT],
                                preferred_element_type=jnp.float32)
    return acc                                           # (co_w, LT) f32


# ---------- Pass 1: conv (not stored) + per-(batch, channel) sum / sumsq -------
def _stats_kernel(w_ref, xm_ref, xh_ref, sum_ref, sq_ref, *, K, LT, L_out):
    j = pl.program_id(1)

    @pl.when(j == 0)
    def _():
        sum_ref[...] = jnp.zeros_like(sum_ref)
        sq_ref[...] = jnp.zeros_like(sq_ref)

    y = _conv_tile(w_ref, xm_ref, xh_ref, K, LT)         # (co_w, LT) f32

    # Mask conv positions >= L_out: the last lane tile overruns the true output
    # length and those positions still read real input samples (nonzero), so
    # they must not contribute to the batch statistics.
    lane = jax.lax.broadcasted_iota(jnp.int32, y.shape, 1)
    y = jnp.where(j * LT + lane < L_out, y, 0.0)

    # Lane-wise partial stats: fold LT into a 128-lane accumulator using
    # vreg-aligned slices (pure VPU adds; no cross-lane XLU reduce, no 1-lane
    # masked stores).  Final 128-lane reduce happens once in the JAX glue.
    ps = y[:, 0:128]
    pq = ps * ps
    for c in range(1, LT // 128):
        ch = y[:, c * 128:(c + 1) * 128]
        ps = ps + ch
        pq = pq + ch * ch
    sum_ref[0] += ps
    sq_ref[0] += pq


# ---------- Pass 2: recompute conv + fused BN FMA + LeakyReLU, NCL output ------
def _bn_act_kernel(w_ref, scale_ref, shift_ref, xm_ref, xh_ref, o_ref, *,
                   K, LT, c_store, activation):
    y = _conv_tile(w_ref, xm_ref, xh_ref, K, LT)         # (co_w, LT) f32
    z = y * scale_ref[...] + shift_ref[...]              # per-channel FMA
    if activation:
        z = jnp.where(z >= 0, z, LEAKY_SLOPE * z)
    o_ref[0] = z[:c_store, :].astype(o_ref.dtype)


@functools.partial(jax.jit, static_argnames=("padding", "activation"))
def conv_upsample_block(x, w, b, gamma, beta, padding, activation=True):
    """x: (N, C_in, L) f32, NCL layout.  Returns (N, C_out, L_out) f32."""
    del b  # per-channel conv bias cancels exactly under train-mode BN stats
    N, c_in, L = x.shape
    c_out, _, K = w.shape
    L_pad = L + 2 * padding
    L_out = L_pad - K + 1
    assert L_out >= 1
    assert K - 1 <= 128, "halo block covers at most 128 extra lanes"

    LT = max(128, min(MAX_LANE_TILE, _round_up(L_out, 128)))   # adaptive lane tile
    n_tiles = pl.cdiv(L_out, LT)
    L_lanes = n_tiles * LT
    L_x = L_lanes + 128            # room for one 128-lane halo block past the grid

    c_in_p = _round_up(c_in, 8)    # X-operand sublane pad (kept at 8 so small c_in
                                   # does not inflate the HBM activation reads)
    co_w = _round_up(c_out, 16)    # bf16 weight sublane pad (native (16,128) tile)
    co_s = _round_up(c_out, 8)     # f32 output sublane pad

    # --- tiny wrapper-side prep: zero-pad + bf16 cast only (no unfolded slab) ---
    x_p = jnp.pad(x, ((0, 0), (0, c_in_p - c_in),
                      (padding, L_x - L - padding))).astype(jnp.bfloat16)
    w_k = jnp.pad(jnp.transpose(w, (2, 0, 1)),
                  ((0, 0), (0, co_w - c_out),
                   (0, c_in_p - c_in))).astype(jnp.bfloat16)   # (K, co_w, c_in_p)

    w_spec = pl.BlockSpec((K, co_w, c_in_p), lambda n, j: (0, 0, 0))     # resident
    xm_spec = pl.BlockSpec((1, c_in_p, LT), lambda n, j: (n, 0, j))      # main tile
    xh_spec = pl.BlockSpec((1, c_in_p, 128),
                           lambda n, j: (n, 0, (j + 1) * (LT // 128)))   # halo tile

    vmem_est = (K * co_w * c_in_p * 2          # resident weights
                + 3 * c_in_p * (LT + 128) * 2  # double-buffered x tiles + halo
                + 4 * co_w * 128 * 4           # stats accumulators
                + 3 * co_s * LT * 4            # double-buffered output tile
                + 4 * co_w * 4)                # scale / shift
    vmem_limit = int(min(32 * 1024 * 1024, max(4 * 1024 * 1024, 4 * vmem_est)))

    # --- Pass 1: conv + stats.  Batch axis "parallel" (megacore / v7x 2 TCs get
    # their own per-batch stats slots); lane-tile axis carries the accumulator.
    s_nb, q_nb = pl.pallas_call(
        functools.partial(_stats_kernel, K=K, LT=LT, L_out=L_out),
        out_shape=(
            jax.ShapeDtypeStruct((N, co_w, 128), jnp.float32),
            jax.ShapeDtypeStruct((N, co_w, 128), jnp.float32),
        ),
        grid=(N, n_tiles),
        in_specs=[w_spec, xm_spec, xh_spec],
        out_specs=(
            pl.BlockSpec((1, co_w, 128), lambda n, j: (n, 0, 0)),
            pl.BlockSpec((1, co_w, 128), lambda n, j: (n, 0, 0)),
        ),
        compiler_params=pltpu.CompilerParams(
            dimension_semantics=("parallel", "arbitrary"),
            vmem_limit_bytes=vmem_limit),
    )(w_k, x_p, x_p)

    # --- Tiny JAX glue: fold train-mode BN (biased var) into per-channel FMA.
    # TODO(synk): use a shifted/Welford-style sumsq if conv outputs ever have
    # |mean| >> std (f32 cancellation in q - s^2).
    count = jnp.float32(N * L_out)
    mean = jnp.sum(s_nb, axis=(0, 2)) / count            # (co_w,)
    var = jnp.maximum(jnp.sum(q_nb, axis=(0, 2)) / count - mean * mean, 0.0)
    inv = jax.lax.rsqrt(var + BN_EPS)
    g = jnp.pad(gamma, (0, co_w - c_out))
    be = jnp.pad(beta, (0, co_w - c_out))
    scale = (g * inv).reshape(co_w, 1)
    shift = (be - mean * g * inv).reshape(co_w, 1)

    # --- Pass 2: recompute conv + BN FMA + LeakyReLU, output directly in NCL.
    # TODO(synk): when c_in*K >> c_out, store a bf16 conv slab in pass 1 instead
    # of recomputing (slab round trip becomes cheaper than a second read of x).
    out_p = pl.pallas_call(
        functools.partial(_bn_act_kernel, K=K, LT=LT, c_store=co_s,
                          activation=activation),
        out_shape=jax.ShapeDtypeStruct((N, co_s, L_lanes), x.dtype),
        grid=(N, n_tiles),
        in_specs=[w_spec,
                  pl.BlockSpec((co_w, 1), lambda n, j: (0, 0)),
                  pl.BlockSpec((co_w, 1), lambda n, j: (0, 0)),
                  xm_spec, xh_spec],
        out_specs=pl.BlockSpec((1, co_s, LT), lambda n, j: (n, 0, j)),
        compiler_params=pltpu.CompilerParams(
            dimension_semantics=("parallel", "parallel"),
            vmem_limit_bytes=vmem_limit),
    )(w_k, scale, shift, x_p, x_p)

    # Only a slice remains (no transpose); exact when c_out%8==0 and L_out%128==0.
    return out_p[:, :c_out, :L_out]


def reference(x, w, b, gamma, beta, padding, activation=True):
    y = jax.lax.conv_general_dilated(
        x, w, window_strides=(1,), padding=[(padding, padding)],
        dimension_numbers=("NCH", "OIH", "NCH"),
    )
    y = y + b[None, :, None]
    mean = jnp.mean(y, axis=(0, 2), keepdims=True)
    var = jnp.mean((y - mean) ** 2, axis=(0, 2), keepdims=True)
    y = (y - mean) * jax.lax.rsqrt(var + BN_EPS)
    y = gamma[None, :, None] * y + beta[None, :, None]
    if activation:
        y = jnp.where(y >= 0, y, LEAKY_SLOPE * y)
    return y


if __name__ == "__main__":
    # Module config: ConvUpsampleBlock(in_channels=4, out_channels=8,
    #                                  kernel_size=3, padding=1, bias=True)
    N, C_IN, C_OUT, L, K, PAD = 2, 4, 8, 16, 3, 1
    L_OUT = L + 2 * PAD - K + 1

    key = jax.random.PRNGKey(0)
    kx, kw, kb = jax.random.split(key, 3)

    x = jax.random.normal(kx, (N, C_IN, L), dtype=jnp.float32)

    fan_in = C_IN * K
    bound = 1.0 / (fan_in ** 0.5)
    w = jax.random.uniform(kw, (C_OUT, C_IN, K), jnp.float32, -bound, bound)
    b = jax.random.uniform(kb, (C_OUT,), jnp.float32, -bound, bound)
    gamma = jnp.ones((C_OUT,), jnp.float32)
    beta = jnp.zeros((C_OUT,), jnp.float32)

    out = conv_upsample_block(x, w, b, gamma, beta, padding=PAD, activation=True)
    out = jax.block_until_ready(out)

    ref = reference(x, w, b, gamma, beta, PAD, activation=True)
    assert out.shape == (N, C_OUT, L_OUT), out.shape
    # bf16 MXU inputs (f32 accumulation) + bf16-consistent batch stats vs a pure
    # f32 reference: expected deviation is a few 1e-3 on BN-normalized values.
    assert jnp.allclose(out, ref, rtol=2e-2, atol=2e-2), "mismatch vs reference"

    print("KERNEL_OK")
</pallas_src>

<mosaic_0001>
module attributes {stable_mosaic.version = 11 : i64} {
  func.func @_stats_kernel(%arg0: i32, %arg1: i32, %arg2: memref<3x16x8xbf16, #tpu.memory_space<vmem>>, %arg3: memref<1x8x128xbf16, #tpu.memory_space<vmem>>, %arg4: memref<1x8x128xbf16, #tpu.memory_space<vmem>>, %arg5: memref<1x16x128xf32, #tpu.memory_space<vmem>>, %arg6: memref<1x16x128xf32, #tpu.memory_space<vmem>>) attributes {dimension_semantics = [#tpu.dimension_semantics<parallel>, #tpu.dimension_semantics<arbitrary>], iteration_bounds = array<i64: 2, 1>, scalar_prefetch = 0 : i64, scratch_operands = 0 : i64, tpu.core_type = #tpu.core_type<tc>, window_params = [{pipeline_mode = #tpu.pipeline_mode<synchronous>, transform_indices = @transform_0, window_bounds = array<i64: 3, 16, 8>}, {transform_indices = @transform_1, window_bounds = array<i64: 1, 8, 128>}, {transform_indices = @transform_2, window_bounds = array<i64: 1, 8, 128>}, {transform_indices = @transform_3, window_bounds = array<i64: 1, 16, 128>}, {transform_indices = @transform_4, window_bounds = array<i64: 1, 16, 128>}]} {
    %c0_i32 = arith.constant 0 : i32
    %0 = arith.cmpi eq, %arg1, %c0_i32 : i32
    %1 = arith.extui %0 : i1 to i32
    %c0_i32_0 = arith.constant 0 : i32
    %2 = arith.cmpi ne, %1, %c0_i32_0 : i32
    scf.if %2 {
      %cst_28 = arith.constant 0.000000e+00 : f32
      %42 = vector.broadcast %cst_28 : f32 to vector<1x16x128xf32>
      %c0_29 = arith.constant 0 : index
      %c0_30 = arith.constant 0 : index
      %c0_31 = arith.constant 0 : index
      %43 = vector.load %arg5[%c0_29, %c0_30, %c0_31] : memref<1x16x128xf32, #tpu.memory_space<vmem>>, vector<1x16x128xf32>
      tpu.vector_store %arg5[%c0_29, %c0_30, %c0_31], %42 {strides = array<i32>} : memref<1x16x128xf32, #tpu.memory_space<vmem>>, vector<1x16x128xf32>,
      %cst_32 = arith.constant 0.000000e+00 : f32
      %44 = vector.broadcast %cst_32 : f32 to vector<1x16x128xf32>
      %c0_33 = arith.constant 0 : index
      %c0_34 = arith.constant 0 : index
      %c0_35 = arith.constant 0 : index
      %45 = vector.load %arg6[%c0_33, %c0_34, %c0_35] : memref<1x16x128xf32, #tpu.memory_space<vmem>>, vector<1x16x128xf32>
      tpu.vector_store %arg6[%c0_33, %c0_34, %c0_35], %44 {strides = array<i32>} : memref<1x16x128xf32, #tpu.memory_space<vmem>>, vector<1x16x128xf32>,
    } else {
    }
    %c0 = arith.constant 0 : index
    %c0_1 = arith.constant 0 : index
    %c0_2 = arith.constant 0 : index
    %3 = vector.load %arg3[%c0, %c0_1, %c0_2] : memref<1x8x128xbf16, #tpu.memory_space<vmem>>, vector<1x8x128xbf16>
    %4 = vector.shape_cast %3 : vector<1x8x128xbf16> to vector<8x128xbf16>
    %c0_3 = arith.constant 0 : index
    %c0_4 = arith.constant 0 : index
    %c0_5 = arith.constant 0 : index
    %5 = vector.load %arg2[%c0_3, %c0_4, %c0_5] : memref<3x16x8xbf16, #tpu.memory_space<vmem>>, vector<1x16x8xbf16>
    %6 = vector.shape_cast %5 : vector<1x16x8xbf16> to vector<16x8xbf16>
    %cst = arith.constant dense<0.000000e+00> : vector<16x128xf32>
    %7 = tpu.matmul %6, %4, %cst {dimension_numbers = #tpu.dot_dimension_numbers<[1], [0], [0], [1], [0, 0, 1, 1], [], []>} : vector<16x8xbf16>, vector<8x128xbf16>, vector<16x128xf32> -> vector<16x128xf32>
    %c0_6 = arith.constant 0 : index
    %c0_7 = arith.constant 0 : index
    %c0_8 = arith.constant 0 : index
    %8 = vector.load %arg4[%c0_6, %c0_7, %c0_8] : memref<1x8x128xbf16, #tpu.memory_space<vmem>>, vector<1x8x128xbf16>
    %9 = vector.shape_cast %8 : vector<1x8x128xbf16> to vector<8x128xbf16>
    %10 = tpu.concatenate %4, %9 in 1 : vector<8x128xbf16>, vector<8x128xbf16> -> vector<8x256xbf16>
    %c1 = arith.constant 1 : index
    %c0_9 = arith.constant 0 : index
    %c0_10 = arith.constant 0 : index
    %11 = vector.load %arg2[%c1, %c0_9, %c0_10] : memref<3x16x8xbf16, #tpu.memory_space<vmem>>, vector<1x16x8xbf16>
    %12 = vector.shape_cast %11 : vector<1x16x8xbf16> to vector<16x8xbf16>
    %13 = vector.extract_strided_slice %10 {offsets = [0, 1], sizes = [8, 128], strides = [1, 1]} : vector<8x256xbf16> to vector<8x128xbf16>
    %cst_11 = arith.constant dense<0.000000e+00> : vector<16x128xf32>
    %14 = tpu.matmul %12, %13, %cst_11 {dimension_numbers = #tpu.dot_dimension_numbers<[1], [0], [0], [1], [0, 0, 1, 1], [], []>} : vector<16x8xbf16>, vector<8x128xbf16>, vector<16x128xf32> -> vector<16x128xf32>
    %15 = arith.addf %7, %14 : vector<16x128xf32>
    %c2 = arith.constant 2 : index
    %c0_12 = arith.constant 0 : index
    %c0_13 = arith.constant 0 : index
    %16 = vector.load %arg2[%c2, %c0_12, %c0_13] : memref<3x16x8xbf16, #tpu.memory_space<vmem>>, vector<1x16x8xbf16>
    %17 = vector.shape_cast %16 : vector<1x16x8xbf16> to vector<16x8xbf16>
    %18 = vector.extract_strided_slice %10 {offsets = [0, 2], sizes = [8, 128], strides = [1, 1]} : vector<8x256xbf16> to vector<8x128xbf16>
    %cst_14 = arith.constant dense<0.000000e+00> : vector<16x128xf32>
    %19 = tpu.matmul %17, %18, %cst_14 {dimension_numbers = #tpu.dot_dimension_numbers<[1], [0], [0], [1], [0, 0, 1, 1], [], []>} : vector<16x8xbf16>, vector<8x128xbf16>, vector<16x128xf32> -> vector<16x128xf32>
    %20 = arith.addf %15, %19 : vector<16x128xf32>
    %21 = tpu.iota {dimensions = array<i32: 1>} : vector<16x128xi32>
    %c128_i32 = arith.constant 128 : i32
    %22 = arith.muli %arg1, %c128_i32 : i32
    %23 = vector.broadcast %22 : i32 to vector<16x128xi32>
    %24 = arith.addi %23, %21 : vector<16x128xi32>
    %c16_i32 = arith.constant 16 : i32
    %25 = vector.broadcast %c16_i32 : i32 to vector<16x128xi32>
    %26 = arith.cmpi slt, %24, %25 : vector<16x128xi32>
    %cst_15 = arith.constant 0.000000e+00 : f32
    %27 = vector.broadcast %cst_15 : f32 to vector<16x128xf32>
    %28 = arith.select %26, %20, %27 : vector<16x128xi1>, vector<16x128xf32>
    %29 = arith.mulf %28, %28 : vector<16x128xf32>
    %c0_16 = arith.constant 0 : index
    %c0_17 = arith.constant 0 : index
    %c0_18 = arith.constant 0 : index
    %30 = vector.load %arg5[%c0_16, %c0_17, %c0_18] : memref<1x16x128xf32, #tpu.memory_space<vmem>>, vector<1x16x128xf32>
    %31 = vector.shape_cast %30 : vector<1x16x128xf32> to vector<16x128xf32>
    %32 = arith.addf %31, %28 : vector<16x128xf32>
    %c0_19 = arith.constant 0 : index
    %c0_20 = arith.constant 0 : index
    %c0_21 = arith.constant 0 : index
    %33 = vector.load %arg5[%c0_19, %c0_20, %c0_21] : memref<1x16x128xf32, #tpu.memory_space<vmem>>, vector<1x16x128xf32>
    %34 = vector.shape_cast %33 : vector<1x16x128xf32> to vector<16x128xf32>
    %35 = vector.shape_cast %32 : vector<16x128xf32> to vector<1x16x128xf32>
    tpu.vector_store %arg5[%c0_19, %c0_20, %c0_21], %35 {strides = array<i32>} : memref<1x16x128xf32, #tpu.memory_space<vmem>>, vector<1x16x128xf32>,
    %c0_22 = arith.constant 0 : index
    %c0_23 = arith.constant 0 : index
    %c0_24 = arith.constant 0 : index
    %36 = vector.load %arg6[%c0_22, %c0_23, %c0_24] : memref<1x16x128xf32, #tpu.memory_space<vmem>>, vector<1x16x128xf32>
    %37 = vector.shape_cast %36 : vector<1x16x128xf32> to vector<16x128xf32>
    %38 = arith.addf %37, %29 : vector<16x128xf32>
    %c0_25 = arith.constant 0 : index
    %c0_26 = arith.constant 0 : index
    %c0_27 = arith.constant 0 : index
    %39 = vector.load %arg6[%c0_25, %c0_26, %c0_27] : memref<1x16x128xf32, #tpu.memory_space<vmem>>, vector<1x16x128xf32>
    %40 = vector.shape_cast %39 : vector<1x16x128xf32> to vector<16x128xf32>
    %41 = vector.shape_cast %38 : vector<16x128xf32> to vector<1x16x128xf32>
    tpu.vector_store %arg6[%c0_25, %c0_26, %c0_27], %41 {strides = array<i32>} : memref<1x16x128xf32, #tpu.memory_space<vmem>>, vector<1x16x128xf32>,
    return
  }
  func.func @transform_0(%arg0: i32, %arg1: i32) -> (i32, i32, i32) {
    %c0_i32 = arith.constant 0 : i32
    %c0_i32_0 = arith.constant 0 : i32
    %c0_i32_1 = arith.constant 0 : i32
    %c0_i32_2 = arith.constant 0 : i32
    return %c0_i32, %c0_i32_0, %c0_i32_1 : i32, i32, i32
  }
  func.func @transform_1(%arg0: i32, %arg1: i32) -> (i32, i32, i32) {
    %c0_i32 = arith.constant 0 : i32
    %c0_i32_0 = arith.constant 0 : i32
    return %arg0, %c0_i32, %arg1 : i32, i32, i32
  }
  func.func @transform_2(%arg0: i32, %arg1: i32) -> (i32, i32, i32) {
    %c1_i32 = arith.constant 1 : i32
    %0 = arith.addi %arg1, %c1_i32 : i32
    %c1_i32_0 = arith.constant 1 : i32
    %1 = arith.muli %0, %c1_i32_0 : i32
    %c0_i32 = arith.constant 0 : i32
    %c0_i32_1 = arith.constant 0 : i32
    return %arg0, %c0_i32, %1 : i32, i32, i32
  }
  func.func @transform_3(%arg0: i32, %arg1: i32) -> (i32, i32, i32) {
    %c0_i32 = arith.constant 0 : i32
    %c0_i32_0 = arith.constant 0 : i32
    %c0_i32_1 = arith.constant 0 : i32
    return %arg0, %c0_i32, %c0_i32_0 : i32, i32, i32
  }
  func.func @transform_4(%arg0: i32, %arg1: i32) -> (i32, i32, i32) {
    %c0_i32 = arith.constant 0 : i32
    %c0_i32_0 = arith.constant 0 : i32
    %c0_i32_1 = arith.constant 0 : i32
    return %arg0, %c0_i32, %c0_i32_0 : i32, i32, i32
  }
}

module attributes {stable_mosaic.version = 11 : i64} {
  func.func @_bn_act_kernel(%arg0: i32, %arg1: i32, %arg2: memref<3x16x8xbf16, #tpu.memory_space<vmem>>, %arg3: memref<16x1xf32, #tpu.memory_space<vmem>>, %arg4: memref<16x1xf32, #tpu.memory_space<vmem>>, %arg5: memref<1x8x128xbf16, #tpu.memory_space<vmem>>, %arg6: memref<1x8x128xbf16, #tpu.memory_space<vmem>>, %arg7: memref<1x8x128xf32, #tpu.memory_space<vmem>>) attributes {dimension_semantics = [#tpu.dimension_semantics<parallel>, #tpu.dimension_semantics<parallel>], iteration_bounds = array<i64: 2, 1>, scalar_prefetch = 0 : i64, scratch_operands = 0 : i64, tpu.core_type = #tpu.core_type<tc>, window_params = [{pipeline_mode = #tpu.pipeline_mode<synchronous>, transform_indices = @transform_0, window_bounds = array<i64: 3, 16, 8>}, {pipeline_mode = #tpu.pipeline_mode<synchronous>, transform_indices = @transform_1, window_bounds = array<i64: 16, 1>}, {pipeline_mode = #tpu.pipeline_mode<synchronous>, transform_indices = @transform_2, window_bounds = array<i64: 16, 1>}, {transform_indices = @transform_3, window_bounds = array<i64: 1, 8, 128>}, {transform_indices = @transform_4, window_bounds = array<i64: 1, 8, 128>}, {transform_indices = @transform_5, window_bounds = array<i64: 1, 8, 128>}]} {
    %c0 = arith.constant 0 : index
    %c0_0 = arith.constant 0 : index
    %c0_1 = arith.constant 0 : index
    %0 = vector.load %arg5[%c0, %c0_0, %c0_1] : memref<1x8x128xbf16, #tpu.memory_space<vmem>>, vector<1x8x128xbf16>
    %1 = vector.shape_cast %0 : vector<1x8x128xbf16> to vector<8x128xbf16>
    %c0_2 = arith.constant 0 : index
    %c0_3 = arith.constant 0 : index
    %c0_4 = arith.constant 0 : index
    %2 = vector.load %arg2[%c0_2, %c0_3, %c0_4] : memref<3x16x8xbf16, #tpu.memory_space<vmem>>, vector<1x16x8xbf16>
    %3 = vector.shape_cast %2 : vector<1x16x8xbf16> to vector<16x8xbf16>
    %cst = arith.constant dense<0.000000e+00> : vector<16x128xf32>
    %4 = tpu.matmul %3, %1, %cst {dimension_numbers = #tpu.dot_dimension_numbers<[1], [0], [0], [1], [0, 0, 1, 1], [], []>} : vector<16x8xbf16>, vector<8x128xbf16>, vector<16x128xf32> -> vector<16x128xf32>
    %c0_5 = arith.constant 0 : index
    %c0_6 = arith.constant 0 : index
    %c0_7 = arith.constant 0 : index
    %5 = vector.load %arg6[%c0_5, %c0_6, %c0_7] : memref<1x8x128xbf16, #tpu.memory_space<vmem>>, vector<1x8x128xbf16>
    %6 = vector.shape_cast %5 : vector<1x8x128xbf16> to vector<8x128xbf16>
    %7 = tpu.concatenate %1, %6 in 1 : vector<8x128xbf16>, vector<8x128xbf16> -> vector<8x256xbf16>
    %c1 = arith.constant 1 : index
    %c0_8 = arith.constant 0 : index
    %c0_9 = arith.constant 0 : index
    %8 = vector.load %arg2[%c1, %c0_8, %c0_9] : memref<3x16x8xbf16, #tpu.memory_space<vmem>>, vector<1x16x8xbf16>
    %9 = vector.shape_cast %8 : vector<1x16x8xbf16> to vector<16x8xbf16>
    %10 = vector.extract_strided_slice %7 {offsets = [0, 1], sizes = [8, 128], strides = [1, 1]} : vector<8x256xbf16> to vector<8x128xbf16>
    %cst_10 = arith.constant dense<0.000000e+00> : vector<16x128xf32>
    %11 = tpu.matmul %9, %10, %cst_10 {dimension_numbers = #tpu.dot_dimension_numbers<[1], [0], [0], [1], [0, 0, 1, 1], [], []>} : vector<16x8xbf16>, vector<8x128xbf16>, vector<16x128xf32> -> vector<16x128xf32>
    %12 = arith.addf %4, %11 : vector<16x128xf32>
    %c2 = arith.constant 2 : index
    %c0_11 = arith.constant 0 : index
    %c0_12 = arith.constant 0 : index
    %13 = vector.load %arg2[%c2, %c0_11, %c0_12] : memref<3x16x8xbf16, #tpu.memory_space<vmem>>, vector<1x16x8xbf16>
    %14 = vector.shape_cast %13 : vector<1x16x8xbf16> to vector<16x8xbf16>
    %15 = vector.extract_strided_slice %7 {offsets = [0, 2], sizes = [8, 128], strides = [1, 1]} : vector<8x256xbf16> to vector<8x128xbf16>
    %cst_13 = arith.constant dense<0.000000e+00> : vector<16x128xf32>
    %16 = tpu.matmul %14, %15, %cst_13 {dimension_numbers = #tpu.dot_dimension_numbers<[1], [0], [0], [1], [0, 0, 1, 1], [], []>} : vector<16x8xbf16>, vector<8x128xbf16>, vector<16x128xf32> -> vector<16x128xf32>
    %17 = arith.addf %12, %16 : vector<16x128xf32>
    %c0_14 = arith.constant 0 : index
    %c0_15 = arith.constant 0 : index
    %18 = vector.load %arg3[%c0_14, %c0_15] : memref<16x1xf32, #tpu.memory_space<vmem>>, vector<16x1xf32>
    %19 = vector.broadcast %18 : vector<16x1xf32> to vector<16x128xf32>
    %20 = arith.mulf %17, %19 : vector<16x128xf32>
    %c0_16 = arith.constant 0 : index
    %c0_17 = arith.constant 0 : index
    %21 = vector.load %arg4[%c0_16, %c0_17] : memref<16x1xf32, #tpu.memory_space<vmem>>, vector<16x1xf32>
    %22 = vector.broadcast %21 : vector<16x1xf32> to vector<16x128xf32>
    %23 = arith.addf %20, %22 : vector<16x128xf32>
    %cst_18 = arith.constant 0.000000e+00 : f32
    %24 = vector.broadcast %cst_18 : f32 to vector<16x128xf32>
    %25 = arith.cmpf oge, %23, %24 : vector<16x128xf32>
    %cst_19 = arith.constant 0.00999999977 : f32
    %26 = vector.broadcast %cst_19 : f32 to vector<16x128xf32>
    %27 = arith.mulf %26, %23 : vector<16x128xf32>
    %28 = arith.select %25, %23, %27 : vector<16x128xi1>, vector<16x128xf32>
    %29 = vector.extract_strided_slice %28 {offsets = [0, 0], sizes = [8, 128], strides = [1, 1]} : vector<16x128xf32> to vector<8x128xf32>
    %c0_20 = arith.constant 0 : index
    %c0_21 = arith.constant 0 : index
    %c0_22 = arith.constant 0 : index
    %30 = vector.load %arg7[%c0_20, %c0_21, %c0_22] : memref<1x8x128xf32, #tpu.memory_space<vmem>>, vector<1x8x128xf32>
    %31 = vector.shape_cast %30 : vector<1x8x128xf32> to vector<8x128xf32>
    %32 = vector.shape_cast %29 : vector<8x128xf32> to vector<1x8x128xf32>
    tpu.vector_store %arg7[%c0_20, %c0_21, %c0_22], %32 {strides = array<i32>} : memref<1x8x128xf32, #tpu.memory_space<vmem>>, vector<1x8x128xf32>,
    return
  }
  func.func @transform_0(%arg0: i32, %arg1: i32) -> (i32, i32, i32) {
    %c0_i32 = arith.constant 0 : i32
    %c0_i32_0 = arith.constant 0 : i32
    %c0_i32_1 = arith.constant 0 : i32
    %c0_i32_2 = arith.constant 0 : i32
    return %c0_i32, %c0_i32_0, %c0_i32_1 : i32, i32, i32
  }
  func.func @transform_1(%arg0: i32, %arg1: i32) -> (i32, i32) {
    %c0_i32 = arith.constant 0 : i32
    %c0_i32_0 = arith.constant 0 : i32
    %c0_i32_1 = arith.constant 0 : i32
    return %c0_i32, %c0_i32_0 : i32, i32
  }
  func.func @transform_2(%arg0: i32, %arg1: i32) -> (i32, i32) {
    %c0_i32 = arith.constant 0 : i32
    %c0_i32_0 = arith.constant 0 : i32
    %c0_i32_1 = arith.constant 0 : i32
    return %c0_i32, %c0_i32_0 : i32, i32
  }
  func.func @transform_3(%arg0: i32, %arg1: i32) -> (i32, i32, i32) {
    %c0_i32 = arith.constant 0 : i32
    %c0_i32_0 = arith.constant 0 : i32
    return %arg0, %c0_i32, %arg1 : i32, i32, i32
  }
  func.func @transform_4(%arg0: i32, %arg1: i32) -> (i32, i32, i32) {
    %c1_i32 = arith.constant 1 : i32
    %0 = arith.addi %arg1, %c1_i32 : i32
    %c1_i32_0 = arith.constant 1 : i32
    %1 = arith.muli %0, %c1_i32_0 : i32
    %c0_i32 = arith.constant 0 : i32
    %c0_i32_1 = arith.constant 0 : i32
    return %arg0, %c0_i32, %1 : i32, i32, i32
  }
  func.func @transform_5(%arg0: i32, %arg1: i32) -> (i32, i32, i32) {
    %c0_i32 = arith.constant 0 : i32
    %c0_i32_0 = arith.constant 0 : i32
    return %arg0, %c0_i32, %arg1 : i32, i32, i32
  }
}

</mosaic_0001>

<bundles_post_ra>
// kernel: conv_upsample_block.3
= control target key start
LH: loop header
LB: loop body
LE: loop exit
PB: predicated region body
PF: predicated region fallthrough
CT: control target
= control target key end

     0   :  { %10 = vsyncpa [#allocation3], 0  ;;  %s969_s0 = inlined_call_operand.vmem [shape: bf16[3,16,8], index: 0, kind: input, shape index: {}]   ;;  %s970_s1 = inlined_call_operand.vmem [shape: f32[16,1], index: 1, kind: input, shape index: {}]   ;;  %s971_s2 = inlined_call_operand.vmem [shape: f32[16,1], index: 2, kind: input, shape index: {}]   ;;  %s972_s3 = inlined_call_operand.vmem [shape: bf16[2,8,256], index: 3, kind: input, shape index: {}, may-alias: {3,4}]   ;;  %s973_s4 = inlined_call_operand.vmem [shape: bf16[2,8,256], index: 4, kind: input, shape index: {}, may-alias: {3,4}]   ;;  %s974_s5 = inlined_call_operand.hbm [shape: f32[2,8,128], index: 5, kind: output, shape index: {}]  }
   0x1   :  { %12 = vsyncpa [#allocation3 + $0x1], 0  ;;  %s830_s18 = smov 0   ;;  %s832_s19 = smov 0  }
   0x2   :  { %s834_s20 = smov 0   ;;  %s836_s21 = smov 0  }
   0x3   :  { %s838_s22 = smov 0   ;;  %s840_s23 = smov 0  }
   0x4 LB: > { %s592_s24 = sadd.s32 4294967295, %s792_s23   ;;  %s593_s25 = sadd.s32 4294967294, %s792_s23   ;;  %s792_s23 = sphi %s840_s23, %s18_s23   ;;  %s788_s22 = sphi %s838_s22, %s981_s22   ;;  %s784_s21 = sphi %s836_s21, %s980_s21   ;;  %s780_s20 = sphi %s834_s20, %s979_s20   ;;  %s776_s19 = sphi %s832_s19, %s978_s19   ;;  %s772_s18 = sphi %s830_s18, %s977_s18  }
   0x5   : > { %s30_s26 = sadd.s32 1, %s788_s22  ;;  %s160_s27 = sadd.s32 1, %s780_s20 }
   0x6   : > { %p32_p0 = scmp.ge.s32.totalorder %s30_s26, 2  ;;  %p170_p1 = scmp.ne.s32.totalorder %s780_s20, %s776_s19 }
   0x7   : > { %p171_p2 = scmp.eq.s32.totalorder %s592_s24, 1  ;;  %p176_p3 = scmp.ne.s32.totalorder %s776_s19, %s772_s18 }
   0x8   : > { %s983_s26 = smov (%p32_p0, %s30_s26), 0  ;;  %p177_p5 = scmp.eq.s32.totalorder %s593_s25, 1 }
   0x9   : > { %p870_p4 = por %p171_p2, %p170_p1  ;;  %s155_s29 = ssub.s32 %s788_s22, %s983_s26 }
   0xa   : > { %p596_p6 = scmp.ge.s32.totalorder %s792_s23, 1  ;;  %p158_p7 = scmp.eq.s32.totalorder %s155_s29, 0 }
   0xb   : > { %p877_p8 = por %p177_p5, %p176_p3  ;;  %p228_p9 = scmp.lt.s32.totalorder %s792_s23, 3 }
   0xc   : > { %s883_s6 = scalar_select %p158_p7, %s780_s20, %s160_s27  }
   0xd   : > { %p229_p10 = pnand %p596_p6, %p228_p9 }
   0xe   : > { %p268_p11 = scmp.lt.s32.totalorder (!%p229_p10), %s784_s21, 1  ;;  %v794_v0 = vmov (!%p229_p10), 0.0   ;;  %vm795_vm0 = vmmov (!%p229_p10), 0   ;;  %vm311_vm1 = vcmask (!%p229_p10), 1043456   ;;  %v796_v1 = vmov (!%p229_p10), 0   ;;  %s797_s16 = smov (!%p229_p10), 126  }
   0xf   : > { %232 = sbr.rel (%p229_p10) target bundleno = 386 (0x182), region = 40  ;;  %632 = vmatprep.subr.bf16.mxu0 (!%p229_p10), %v794_v0  ;;  %634 = vmatprep.mubr.msk.bf16.mxu0 (!%p229_p10), %vm795_vm0, %v794_v0  ;;  %s798_s17 = smov (!%p229_p10), 127   ;;  %v711_v5 = vld [vmem:[%s969_s0] sm:$0xff] (!%p229_p10)   ;;  %vm307_vm2 = vcmask (!%p229_p10), 64512   ;;  %vm418_vm3 = vcmask (!%p229_p10), 1031168   ;;  %vm305_vm4 = vcmask (!%p229_p10), 1039360  }
  0x10   : > { %626 = vmatprep.subr.bf16.mxu1 (!%p229_p10), %v794_v0  ;;  %628 = vmatprep.mubr.msk.bf16.mxu1 (!%p229_p10), %vm795_vm0, %v794_v0  ;;  %v467_v6 = vld [vmem:[%s970_s1] sm:$0xff] (!%p229_p10)  ;;  %v712_v16 = vld [vmem:[%s969_s0 + $0x8] sm:$0xff] (!%p229_p10)   ;;  %v713_v17 = vld [vmem:[%s969_s0 + $0x10] sm:$0xff] (!%p229_p10)   ;;  %s265_s13 = sand.u32 (!%p229_p10), 1, %s776_s19  }
  0x11   : > { %709 = vset.pattern.permute.xlu0 (!%p229_p10), %v796_v1  ;;  %710 = vset.pattern.permute.xlu1 (!%p229_p10), %v796_v1  ;;  %v474_v7 = vld [vmem:[%s971_s2] sm:$0xff] (!%p229_p10)  ;;  %s597_s14 = sshll.u32 (!%p229_p10), %s265_s13, 3  ;;  %s486_s29 = scalar_lea.sflag (!%p229_p10), [#allocation3], %s265_s13 }
  0x16   : > { %s269_s7 = scalar_select %p268_p11, %s784_s21, 1 }
  0x18   : > { %s616_s8 = sshll.u32 %s269_s7, 3 }
  0x19   : > { %s275_s11 = scalar_lea.vmem %s972_s3, %s616_s8  ;;  %s618_s12 = sadd.s32 4, %s616_s8 }
  0x1a   : > { %v287_v2 = vld [vmem:[%s275_s11] sm:$0xf]  ;;  %s284_s15 = scalar_lea.vmem %s973_s4, %s618_s12 }
  0x1b   : > { %414 = vrot.lane.b32.xlu1 %v287_v2, %s797_s16  ;;  %301 = vrot.lane.b32.xlu0 %v287_v2, %s798_s17  ;;  %v364_v3 = vsel %vm311_vm1, %v287_v2, 0  ;;  %v290_v4 = vld [vmem:[%s284_s15] sm:$0xf]  ;;  %s613_s15 = sshll.u32 %s784_s21, 7  ;;  %s799_s21 = smov [#allocation2]  }
  0x1c   : > { %633 = vmatpush3.bf16.msra.mxu0 %v364_v3  ;;  %s922_s27 = scalar_lea.hbm %s974_s5, %s613_s15  ;;  %s718_s8 = sshll.u32 %s799_s21, 4  ;;  %s719_s8 = int_to_ptr.vmem [resolvable:$false] %s718_s8 }
  0x1d   : > { %638 = vmatprep.subr.bf16.mxu0 %v794_v0  ;;  %s720_s9 = scalar_lea.vmem %s719_s8, 256 }
  0x1f   : > { %416 = vrot.lane.b32.xlu1 %v290_v4, %s797_s16  ;;  %303 = vrot.lane.b32.xlu0 %v290_v4, %s798_s17  ;;  %s267_s16 = scalar_lea.vmem [#allocation2], %s597_s14 }
  0x20   : > { %635 = vmatmul.mubr.msk.bf16.vlgmr.msra.gmra.mrb[0].mxu0 %vm307_vm2, %v711_v5  ;;  %s500_s17 = sshll.u32 %s267_s16, 4  ;;  %s924_s17 = int_to_ptr.vmem [resolvable:$true] %s500_s17 }
  0x21   : > { %640 = vmatprep.mubr.msk.bf16.mxu0 %vm795_vm0, %v794_v0  ;;  %s714_s7 = scalar_lea.vmem %s924_s17, 128  ;;  %p721_p1 = scmp.lt.s32.totalorder %s924_s17, %s719_s8 }
  0x22   : > { %p715_p12 = scmp.ne.s32.totalorder %s924_s17, %s714_s7  ;;  %p722_p2 = scmp.lt.s32.totalorder %s720_s9, %s714_s7 }
  0x23   : > { %470 = vperm.xlu0 %709, %v467_v6   ;;  %477 = vperm.xlu1 %710, %v474_v7  }
  0x24   : > { %p716_p13 = pnand %p715_p12, %p870_p4  ;;  %p723_p3 = por %p722_p2, %p721_p1 }
  0x26   : > { %p717_p0 = pneg %p716_p13 }
  0x28   : > { %p724_p5 = pnand %p723_p3, %p717_p0 }
  0x8d   : > { %v415_v8 = vpop.permute.xlu1 %414  ;;  %v302_v9 = vpop.permute.xlu0 %301 }
  0x91   : > { %v417_v10 = vpop.permute.xlu1 %416  ;;  %v304_v11 = vpop.permute.xlu0 %303 }
  0x92   : > { %v419_v12 = vsel %vm418_vm3, %v415_v8, %v417_v10  ;;  %v306_v13 = vsel %vm305_vm4, %v302_v9, %v304_v11 }
  0x93   : > { %v424_v14 = vsel %vm311_vm1, %v419_v12, 0  ;;  %v313_v15 = vsel %vm311_vm1, %v306_v13, 0 }
  0x94   : > { %627 = vmatpush3.bf16.msra.mxu1 %v313_v15  ;;  %639 = vmatpush3.bf16.msra.mxu0 %v424_v14 }
  0x97   : > { %629 = vmatmul.mubr.msk.bf16.vlgmr.msra.gmra.mrb[0].mxu1 %vm307_vm2, %v712_v16  ;;  %641 = vmatmul.mubr.msk.bf16.vlgmr.msra.gmra.mrb[0].mxu0 %vm307_vm2, %v713_v17 }
  0xa2   : > { %v471_v18 = vpop.permute.xlu0 %470  ;;  %v478_v19 = vpop.permute.xlu1 %477 }
 0x16a   : > { %v349_v20 = vpop.f32.mrb[0].mxu1  ;;  %v460_v21 = vpop.f32.mrb[0].mxu0 }
 0x16b   : > { %v644_v22 = vadd.f32 %v460_v21, %v349_v20  ;;  %v642_v23 = vpop.f32.mrb[1].mxu0  ;;  %v630_v24 = vpop.f32.mrb[1].mxu1 }
 0x16c   : > { %v463_v25 = vpop.f32.mrb[2].mxu0  ;;  %v352_v26 = vpop.f32.mrb[2].mxu1 }
 0x16d   : > { %v473_v27 = vmul.f32 %v644_v22, %v471_v18  ;;  %v643_v28 = vpop.f32.mrb[3].mxu0  ;;  %v631_v29 = vpop.f32.mrb[3].mxu1 }
 0x16f   : > { %v480_v30 = vadd.f32 %v478_v19, %v473_v27 }
 0x171   : > { %vm481_vm5 = vcmp.ge.f32.partialorder %v480_v30, 0.0  ;;  %v482_v31 = vmul.f32 0.01, %v480_v30 }
 0x173   : > { %v483_v32 = vsel %vm481_vm5, %v480_v30, %v482_v31 }
 0x174   : > { %484 = vst [vmem:[%s267_s16] sm:$0xff] %v483_v32 }
 0x175   : > { %727 = shalt.err (!%p724_p5)
}
 0x176   : > { %s728_s10 = scalar_lea.hbm %s922_s27, 128  ;;  %s732_s13 = scalar_lea.hbm %s974_s5, 256 }
 0x177   : > { %p729_p6 = scmp.ne.s32.totalorder %s922_s27, %s728_s10  ;;  %p733_p10 = scmp.lt.u32.totalorder %s922_s27, %s974_s5 }
 0x178   : > { %p734_p11 = scmp.lt.u32.totalorder %s732_s13, %s728_s10  ;;  %p736_p13 = scmp.lt.u32.totalorder %s728_s10, %s922_s27 }
 0x179   : > { %p730_p7 = pnand %p729_p6, %p870_p4 }
 0x17a   : > { %p735_p12 = por %p734_p11, %p733_p10 }
 0x17b   : > { %p731_p9 = pneg %p730_p7 }
 0x17c   : > { %p737_p0 = por %p736_p13, %p735_p12 }
 0x17e   : > { %p738_p1 = pnand %p737_p0, %p731_p9 }
 0x180   : > { %741 = shalt.err (!%p738_p1)
}
 0x181   : > { %649 = dma.vmem_to_hbm [thread:$0]  (%p870_p4), %s924_s17, 128, %s922_s27, %s486_s29  }
 0x182 PF: > { %p655_p2 = scmp.ge.s32.totalorder %s792_s23, 2  ;;  %s512_s16 = sand.u32 1, %s772_s18  }
 0x183   : > { %s513_s24 = scalar_lea.sflag [#allocation3], %s512_s16 }
 0x184   : > { %p652_p3 = pnand %p655_p2, %p877_p8 }
 0x186   : > { %767 = dma.done.wait (!%p652_p3), %s513_s24, 128  }
 0x187   : > { %769 = vsyncadd (!%p652_p3), %s513_s24, 4294967168  ;;  %s18_s23 = sadd.s32 1, %s792_s23   ;;  %s977_s18 = smov %s776_s19 }
 0x188   : > { %p15_p5 = scmp.ge.s32.totalorder %s18_s23, 4   ;;  %s978_s19 = smov %s780_s20 }
 0x189   : > { %s979_s20 = smov %s883_s6  ;;  %s980_s21 = smov %s788_s22 }
 0x18a   : > { %s981_s22 = smov %s983_s26  ;;  %17 = sbr.rel (!%p15_p5) target bundleno = 4 (0x4), region = 80 }
 0x191   :  { %518 = vsyncpa [#allocation3], 1 }
 0x192   :  { %520 = vsyncpa [#allocation3 + $0x1], 1 }

// kernel: conv_upsample_block.2
= control target key start
LH: loop header
LB: loop body
LE: loop exit
PB: predicated region body
PF: predicated region fallthrough
CT: control target
= control target key end

     0   :  { %s752_s15 = smov 0   ;;  %s754_s16 = smov 0   ;;  %s813_s0 = inlined_call_operand.vmem [shape: bf16[3,16,8], index: 0, kind: input, shape index: {}]   ;;  %s814_s1 = inlined_call_operand.vmem [shape: bf16[2,8,256], index: 1, kind: input, shape index: {}, may-alias: {1,2}]   ;;  %s815_s2 = inlined_call_operand.vmem [shape: bf16[2,8,256], index: 2, kind: input, shape index: {}, may-alias: {1,2}]   ;;  %s816_s3 = inlined_call_operand.vmem [shape: f32[2,16,128], index: 3, kind: output, shape index: {0}]   ;;  %s817_s4 = inlined_call_operand.vmem [shape: f32[2,16,128], index: 4, kind: output, shape index: {1}]  }
   0x1   :  { %s756_s17 = smov 0  }
   0x2 LB: > { %s27_s18 = sadd.s32 1, %s717_s16  ;;  %p611_p0 = scmp.ge.s32.totalorder %s721_s17, 1  ;;  %s721_s17 = sphi %s756_s17, %s15_s17   ;;  %s717_s16 = sphi %s754_s16, %s819_s16   ;;  %s713_s15 = sphi %s752_s15, %s818_s15  }
   0x3   : > { %p29_p1 = scmp.ge.s32.totalorder %s27_s18, 2  ;;  %p201_p2 = scmp.lt.s32.totalorder %s721_s17, 3 }
   0x5   : > { %s821_s18 = smov (%p29_p1, %s27_s18), 0  ;;  %p202_p3 = pnand %p611_p0, %p201_p2 }
   0x6   : > { %p244_p4 = scmp.lt.s32.totalorder (!%p202_p3), %s713_s15, 1  ;;  %v723_v0 = vmov (!%p202_p3), 0.0   ;;  %vm724_vm0 = vmmov (!%p202_p3), 0   ;;  %vm305_vm1 = vcmask (!%p202_p3), 1043456   ;;  %s725_s24 = smov (!%p202_p3), 126   ;;  %v696_v4 = vld [vmem:[%s813_s0] sm:$0xff] (!%p202_p3)   ;;  %v465_v15 = vlaneseq (!%p202_p3) }
   0x7   : > { %205 = sbr.rel (%p202_p3) target bundleno = 362 (0x16a), region = 32  ;;  %650 = vmatprep.subr.bf16.mxu0 (!%p202_p3), %v723_v0  ;;  %652 = vmatprep.mubr.msk.bf16.mxu0 (!%p202_p3), %vm724_vm0, %v723_v0  ;;  %s726_s25 = smov (!%p202_p3), 127   ;;  %vm301_vm2 = vcmask (!%p202_p3), 64512   ;;  %vm414_vm3 = vcmask (!%p202_p3), 1031168   ;;  %vm299_vm4 = vcmask (!%p202_p3), 1039360   ;;  %v697_v13 = vld [vmem:[%s813_s0 + $0x8] sm:$0xff] (!%p202_p3)  }
   0x8   : > { %644 = vmatprep.subr.bf16.mxu1 (!%p202_p3), %v723_v0  ;;  %646 = vmatprep.mubr.msk.bf16.mxu1 (!%p202_p3), %vm724_vm0, %v723_v0  ;;  %v698_v14 = vld [vmem:[%s813_s0 + $0x10] sm:$0xff] (!%p202_p3)   ;;  %v466_v16 = vand.u32 (!%p202_p3), 127, %v465_v15 }
   0xa   : > { %vm470_vm5 = vcmp.lt.s32.totalorder (!%p202_p3), %v466_v16, 16 }
   0xe   : > { %s823_s15 = smov (!%p244_p4, %s713_s15), 1 }
   0xf   : > { %s632_s19 = sshll.u32 %s823_s15, 3  ;;  %s635_s9 = sshll.u32 %s823_s15, 4 }
  0x10   : > { %s251_s22 = scalar_lea.vmem %s814_s1, %s632_s19  ;;  %s634_s23 = sadd.s32 4, %s632_s19 }
  0x11   : > { %v281_v1 = vld [vmem:[%s251_s22] sm:$0xf]  ;;  %s260_s28 = scalar_lea.vmem %s815_s2, %s634_s23  ;;  %s266_s12 = scalar_lea.vmem %s816_s3, %s635_s9 }
  0x12   : > { %410 = vrot.lane.b32.xlu1 %v281_v1, %s725_s24  ;;  %295 = vrot.lane.b32.xlu0 %v281_v1, %s726_s25  ;;  %v359_v2 = vsel %vm305_vm1, %v281_v1, 0  ;;  %v284_v3 = vld [vmem:[%s260_s28] sm:$0xf]  ;;  %s271_s15 = scalar_lea.vmem %s817_s4, %s635_s9 }
  0x13   : > { %651 = vmatpush3.bf16.msra.mxu0 %v359_v2 }
  0x14   : > { %656 = vmatprep.subr.bf16.mxu0 %v723_v0 }
  0x16   : > { %412 = vrot.lane.b32.xlu1 %v284_v3, %s725_s24  ;;  %297 = vrot.lane.b32.xlu0 %v284_v3, %s726_s25 }
  0x17   : > { %653 = vmatmul.mubr.msk.bf16.vlgmr.msra.gmra.mrb[0].mxu0 %vm301_vm2, %v696_v4 }
  0x18   : > { %658 = vmatprep.mubr.msk.bf16.mxu0 %vm724_vm0, %v723_v0 }
  0x84   : > { %v411_v5 = vpop.permute.xlu1 %410  ;;  %v296_v6 = vpop.permute.xlu0 %295 }
  0x88   : > { %v413_v7 = vpop.permute.xlu1 %412  ;;  %v298_v8 = vpop.permute.xlu0 %297 }
  0x89   : > { %v415_v9 = vsel %vm414_vm3, %v411_v5, %v413_v7  ;;  %v300_v10 = vsel %vm299_vm4, %v296_v6, %v298_v8 }
  0x8a   : > { %v420_v11 = vsel %vm305_vm1, %v415_v9, 0  ;;  %v307_v12 = vsel %vm305_vm1, %v300_v10, 0 }
  0x8b   : > { %645 = vmatpush3.bf16.msra.mxu1 %v307_v12  ;;  %657 = vmatpush3.bf16.msra.mxu0 %v420_v11 }
  0x8e   : > { %647 = vmatmul.mubr.msk.bf16.vlgmr.msra.gmra.mrb[0].mxu1 %vm301_vm2, %v697_v13  ;;  %659 = vmatmul.mubr.msk.bf16.vlgmr.msra.gmra.mrb[0].mxu0 %vm301_vm2, %v698_v14 }
 0x161   : > { %v343_v17 = vpop.f32.mrb[0].mxu1  ;;  %v456_v18 = vpop.f32.mrb[0].mxu0 }
 0x162   : > { %v662_v19 = vadd.f32 %v456_v18, %v343_v17  ;;  %v648_v20 = vpop.f32.mrb[1].mxu1  ;;  %v660_v21 = vpop.f32.mrb[1].mxu0 }
 0x163   : > { %v346_v22 = vpop.f32.mrb[2].mxu1  ;;  %v459_v23 = vpop.f32.mrb[2].mxu0 }
 0x164   : > { %v471_v24 = vsel %vm470_vm5, %v662_v19, 0.0  ;;  %v663_v25 = vadd.f32 %v459_v23, %v346_v22  ;;  %v661_v26 = vpop.f32.mrb[3].mxu0  ;;  %v649_v27 = vpop.f32.mrb[3].mxu1 }
 0x165   : > { %v473_v28 = vmul.f32 %v471_v24, %v471_v24  ;;  %479 = vst [vmem:[%s266_s12] sm:$0xff] %v471_v24 }
 0x166   : > { %v472_v29 = vsel %vm470_vm5, %v663_v25, 0.0 }
 0x167   : > { %v474_v30 = vmul.f32 %v472_v29, %v472_v29  ;;  %485 = vst [vmem:[%s271_s15] sm:$0xff] %v473_v28  ;;  %480 = vst [vmem:[%s266_s12 + $0x8] sm:$0xff] %v472_v29 }
 0x169   : > { %486 = vst [vmem:[%s271_s15 + $0x8] sm:$0xff] %v474_v30 }
 0x16a PF: > { %s15_s17 = sadd.s32 1, %s721_s17   ;;  %s818_s15 = smov %s717_s16 }
 0x16b   : > { %p12_p5 = scmp.ge.s32.totalorder %s15_s17, 4   ;;  %s819_s16 = smov %s821_s18 }
 0x16d   :  { %14 = sbr.rel (!%p12_p5) target bundleno = 2 (0x2), region = 83 }

</bundles_post_ra>
